<compile_context>
chip_gen: v6e
topology: v6e:2x2x1
jax: 0.10.0
libtpu: 0.0.40
codegen_flags: <defaults>
</compile_context>

<pallas_src>
import jax
import jax.numpy as jnp
from jax.experimental import pallas as pl
from jax.experimental.pallas import tpu as pltpu

LEAKY_SLOPE = 0.2
LANE = 128


def _leaky_relu(x, slope=LEAKY_SLOPE):
    # max(x, a*x) == LeakyReLU_a(x) for 0 < a < 1 (mul+max, no cmp/select).
    return jnp.maximum(x, slope * x)


def _round_up(x, m):
    return (x + m - 1) // m * m


# --------------------------------------------------------------------------
# Kernel: one batch tile per grid step; all weights VMEM-resident.
# --------------------------------------------------------------------------
def generator_mlp_kernel(labels_ref, noise_ref,
                         ew1_ref, w1b_ref, b1_ref,
                         w2_ref, b2_ref,
                         w3_ref, b3_ref,
                         w4_ref, b4_ref,
                         o_ref):
    labels = labels_ref[...]                       # (TB, 1) int32
    tb = labels.shape[0]
    nc_pad = ew1_ref.shape[0]

    # Fused embedding + first-layer label term: one_hot @ (embed @ W1a).
    class_ids = jax.lax.broadcasted_iota(jnp.int32, (tb, nc_pad), 1)
    one_hot = (class_ids == labels).astype(jnp.bfloat16)        # (TB, NC_PAD)

    h = (jnp.dot(one_hot, ew1_ref[...], preferred_element_type=jnp.float32)
         + jnp.dot(noise_ref[...], w1b_ref[...],
                   preferred_element_type=jnp.float32)
         + b1_ref[...])
    h = _leaky_relu(h)                                          # (TB, 128)

    h = jnp.dot(h.astype(jnp.bfloat16), w2_ref[...],
                preferred_element_type=jnp.float32) + b2_ref[...]
    h = _leaky_relu(h)                                          # (TB, 256)

    h = jnp.dot(h.astype(jnp.bfloat16), w3_ref[...],
                preferred_element_type=jnp.float32) + b3_ref[...]
    h = _leaky_relu(h)                                          # (TB, 512)

    # Lane-dense final layer: padded class columns carry bias -1e30 -> exp==0.
    logits = jnp.dot(h.astype(jnp.bfloat16), w4_ref[...],
                     preferred_element_type=jnp.float32) + b4_ref[...]

    m = jnp.max(logits, axis=1, keepdims=True)
    e = jnp.exp(logits - m)
    denom = jnp.sum(e, axis=1, keepdims=True)
    o_ref[...] = (e * pl.reciprocal(denom, approx=True)).astype(o_ref.dtype)


# --------------------------------------------------------------------------
# One-time parameter prep: EW1 fusion, bf16 casts, lane-padded final layer.
# --------------------------------------------------------------------------
def _prepare_operands(params, nc_pad):
    embed = params["embed"].astype(jnp.float32)
    num_classes, latent = embed.shape

    embed_p = jnp.zeros((nc_pad, latent), jnp.float32).at[:num_classes].set(embed)

    w1 = params["w1"].astype(jnp.float32)
    w1a, w1b = w1[:latent], w1[latent:]
    # EW1 = embed @ W1[:L]; bf16 inputs / f32 accumulation (mirrors the MXU
    # path), stored bf16.  Padded class rows are zero.
    ew1 = jnp.dot(embed_p.astype(jnp.bfloat16), w1a.astype(jnp.bfloat16),
                  preferred_element_type=jnp.float32).astype(jnp.bfloat16)
    w1b = w1b.astype(jnp.bfloat16)
    b1 = params["b1"].reshape(1, -1).astype(jnp.float32)

    w2 = params["w2"].astype(jnp.bfloat16)
    b2 = params["b2"].reshape(1, -1).astype(jnp.float32)
    w3 = params["w3"].astype(jnp.bfloat16)
    b3 = params["b3"].reshape(1, -1).astype(jnp.float32)

    w4 = params["w4"]
    hid3 = w4.shape[0]
    w4_p = jnp.zeros((hid3, nc_pad), jnp.bfloat16).at[:, :num_classes].set(
        w4.astype(jnp.bfloat16))
    b4_p = jnp.full((1, nc_pad), -1e30, jnp.float32).at[:, :num_classes].set(
        params["b4"].reshape(1, -1).astype(jnp.float32))

    return ew1, w1b, b1, w2, b2, w3, b3, w4_p, b4_p


def _pick_batch_tile(batch, batch_tile):
    # Keep >= 2 grid steps when the batch allows it (both v7x TensorCores get
    # work via the "parallel" axis); tiles are multiples of 8 (sublane).
    half = _round_up(pl.cdiv(batch, 2), 8)
    return max(8, min(batch_tile, half))


# --------------------------------------------------------------------------
# Wrapper factory: prep once, return a jitted forward(labels, noise).
# --------------------------------------------------------------------------
def make_generator_forward(params, *, batch_tile=512, out_dtype=jnp.float32):
    """labels: (B,) int, noise: (B, latent_dim) -> (B, num_classes)."""
    num_classes, latent_dim = params["embed"].shape
    nc_pad = _round_up(max(num_classes, LANE), LANE)
    ew1, w1b, b1, w2, b2, w3, b3, w4_p, b4_p = _prepare_operands(params, nc_pad)
    hid1, hid2, hid3 = ew1.shape[1], w2.shape[1], w3.shape[1]

    @jax.jit
    def forward(labels, noise):
        B = labels.shape[0]
        tb = _pick_batch_tile(B, batch_tile)
        b_pad = _round_up(B, tb)

        labels_p = labels.astype(jnp.int32).reshape(B, 1)
        noise_p = noise.astype(jnp.bfloat16)
        if b_pad != B:
            labels_p = jnp.pad(labels_p, ((0, b_pad - B), (0, 0)))
            noise_p = jnp.pad(noise_p, ((0, b_pad - B), (0, 0)))

        batched = lambda i: (i, 0)      # per-batch-tile blocks
        resident = lambda i: (0, 0)     # weights: same block every grid step

        def weight_spec(shape):
            # Block index never changes -> a single VMEM buffer suffices.
            return pl.BlockSpec(shape, resident, pipeline_mode=pl.Buffered(1))

        in_specs = [
            # (tb, 1) int32 lane-pads to (tb, 128) in VMEM; fine at tb <= 1024.
            pl.BlockSpec((tb, 1), batched),                 # labels
            pl.BlockSpec((tb, latent_dim), batched),        # noise (bf16)
            weight_spec((nc_pad, hid1)),                    # EW1 = embed@W1a
            weight_spec((latent_dim, hid1)),                # W1 (noise half)
            weight_spec((1, hid1)),                         # b1
            weight_spec((hid1, hid2)),                      # W2
            weight_spec((1, hid2)),                         # b2
            weight_spec((hid2, hid3)),                      # W3
            weight_spec((1, hid3)),                         # b3
            weight_spec((hid3, nc_pad)),                    # W4 (lane-padded)
            weight_spec((1, nc_pad)),                       # b4 (lane-padded)
        ]
        out_specs = pl.BlockSpec((tb, nc_pad), batched)

        flops = 2 * b_pad * (nc_pad * hid1 + latent_dim * hid1
                             + hid1 * hid2 + hid2 * hid3 + hid3 * nc_pad)
        transcendentals = b_pad * nc_pad
        out_bytes = jnp.dtype(out_dtype).itemsize
        bytes_accessed = (b_pad * 4 + noise_p.size * 2
                          + (ew1.size + w1b.size + w2.size + w3.size
                             + w4_p.size) * 2
                          + (b1.size + b2.size + b3.size + b4_p.size) * 4
                          + b_pad * nc_pad * out_bytes)

        out_padded = pl.pallas_call(
            generator_mlp_kernel,
            out_shape=jax.ShapeDtypeStruct((b_pad, nc_pad), out_dtype),
            grid=(b_pad // tb,),
            in_specs=in_specs,
            out_specs=out_specs,
            compiler_params=pltpu.CompilerParams(
                dimension_semantics=("parallel",)),
            cost_estimate=pl.CostEstimate(
                flops=flops, transcendentals=transcendentals,
                bytes_accessed=bytes_accessed),
        )(labels_p, noise_p, ew1, w1b, b1, w2, b2, w3, b3, w4_p, b4_p)

        return out_padded[:B, :num_classes]

    return forward


# --------------------------------------------------------------------------
# Synthetic parameters + pure-JAX reference (mirrors the kernel's bf16 matmuls)
# --------------------------------------------------------------------------
def init_params(key, latent_dim, num_classes):
    ks = jax.random.split(key, 9)

    def linear_init(kw, kb, fan_in, fan_out):
        bound = 1.0 / jnp.sqrt(fan_in)
        w = jax.random.uniform(kw, (fan_in, fan_out), jnp.float32, -bound, bound)
        b = jax.random.uniform(kb, (fan_out,), jnp.float32, -bound, bound)
        return w, b

    embed = jax.random.normal(ks[0], (num_classes, latent_dim), jnp.float32)
    w1, b1 = linear_init(ks[1], ks[2], 2 * latent_dim, 128)
    w2, b2 = linear_init(ks[3], ks[4], 128, 256)
    w3, b3 = linear_init(ks[5], ks[6], 256, 512)
    w4, b4 = linear_init(ks[7], ks[8], 512, num_classes)
    return dict(embed=embed, w1=w1, b1=b1, w2=w2, b2=b2,
                w3=w3, b3=b3, w4=w4, b4=b4)


def reference_forward(labels, noise, params):
    embed = params["embed"].astype(jnp.bfloat16).astype(jnp.float32)
    gen_input = jnp.take(embed, labels, axis=0)
    x = jnp.concatenate([gen_input, noise], axis=-1)

    def dense(x, w, b):
        y = jnp.dot(x.astype(jnp.bfloat16), w.astype(jnp.bfloat16),
                    preferred_element_type=jnp.float32)
        return y + b.reshape(1, -1).astype(jnp.float32)

    h = _leaky_relu(dense(x, params["w1"], params["b1"]))
    h = _leaky_relu(dense(h, params["w2"], params["b2"]))
    h = _leaky_relu(dense(h, params["w3"], params["b3"]))
    logits = dense(h, params["w4"], params["b4"])
    return jax.nn.softmax(logits, axis=1)


if __name__ == "__main__":
    latent_dim = 32
    num_classes = 16
    batch = 8

    key = jax.random.PRNGKey(0)
    k_params, k_labels, k_noise = jax.random.split(key, 3)

    params = init_params(k_params, latent_dim, num_classes)
    labels = jax.random.randint(k_labels, (batch,), 0, num_classes,
                                dtype=jnp.int32)
    noise = jax.random.normal(k_noise, (batch, latent_dim), jnp.float32)

    forward = make_generator_forward(params)          # prep hoisted; jitted
    out = jax.block_until_ready(forward(labels, noise))

    ref = reference_forward(labels, noise, params)
    assert out.shape == (batch, num_classes)
    assert bool(jnp.all(jnp.isfinite(out)))
    # approx reciprocal + bf16 matmuls + bf16 EW1 rounding -> loose tolerances.
    assert jnp.allclose(jnp.sum(out, axis=1), 1.0, atol=3e-3)
    assert jnp.allclose(out, ref, atol=3e-3, rtol=2e-2)

    print("KERNEL_OK")
</pallas_src>

<mosaic_0001>
module attributes {stable_mosaic.version = 11 : i64} {
  func.func @generator_mlp_kernel(%arg0: i32, %arg1: memref<8x1xi32, #tpu.memory_space<vmem>>, %arg2: memref<8x32xbf16, #tpu.memory_space<vmem>>, %arg3: memref<128x128xbf16, #tpu.memory_space<vmem>>, %arg4: memref<32x128xbf16, #tpu.memory_space<vmem>>, %arg5: memref<1x128xf32, #tpu.memory_space<vmem>>, %arg6: memref<128x256xbf16, #tpu.memory_space<vmem>>, %arg7: memref<1x256xf32, #tpu.memory_space<vmem>>, %arg8: memref<256x512xbf16, #tpu.memory_space<vmem>>, %arg9: memref<1x512xf32, #tpu.memory_space<vmem>>, %arg10: memref<512x128xbf16, #tpu.memory_space<vmem>>, %arg11: memref<1x128xf32, #tpu.memory_space<vmem>>, %arg12: memref<8x128xf32, #tpu.memory_space<vmem>>) attributes {dimension_semantics = [#tpu.dimension_semantics<parallel>], iteration_bounds = array<i64: 1>, scalar_prefetch = 0 : i64, scratch_operands = 0 : i64, tpu.core_type = #tpu.core_type<tc>, window_params = [{transform_indices = @transform_0, window_bounds = array<i64: 8, 1>}, {transform_indices = @transform_1, window_bounds = array<i64: 8, 32>}, {pipeline_mode = #tpu.pipeline_mode<synchronous>, transform_indices = @transform_2, window_bounds = array<i64: 128, 128>}, {pipeline_mode = #tpu.pipeline_mode<synchronous>, transform_indices = @transform_3, window_bounds = array<i64: 32, 128>}, {pipeline_mode = #tpu.pipeline_mode<synchronous>, transform_indices = @transform_4, window_bounds = array<i64: 1, 128>}, {pipeline_mode = #tpu.pipeline_mode<synchronous>, transform_indices = @transform_5, window_bounds = array<i64: 128, 256>}, {pipeline_mode = #tpu.pipeline_mode<synchronous>, transform_indices = @transform_6, window_bounds = array<i64: 1, 256>}, {pipeline_mode = #tpu.pipeline_mode<synchronous>, transform_indices = @transform_7, window_bounds = array<i64: 256, 512>}, {pipeline_mode = #tpu.pipeline_mode<synchronous>, transform_indices = @transform_8, window_bounds = array<i64: 1, 512>}, {pipeline_mode = #tpu.pipeline_mode<synchronous>, transform_indices = @transform_9, window_bounds = array<i64: 512, 128>}, {pipeline_mode = #tpu.pipeline_mode<synchronous>, transform_indices = @transform_10, window_bounds = array<i64: 1, 128>}, {transform_indices = @transform_11, window_bounds = array<i64: 8, 128>}]} {
    %c0 = arith.constant 0 : index
    %c0_0 = arith.constant 0 : index
    %0 = vector.load %arg1[%c0, %c0_0] : memref<8x1xi32, #tpu.memory_space<vmem>>, vector<8x1xi32>
    %1 = tpu.iota {dimensions = array<i32: 1>} : vector<8x128xi32>
    %2 = vector.broadcast %0 : vector<8x1xi32> to vector<8x128xi32>
    %3 = arith.cmpi eq, %1, %2 : vector<8x128xi32>
    %4 = arith.extui %3 : vector<8x128xi1> to vector<8x128xi32>
    %5 = arith.sitofp %4 : vector<8x128xi32> to vector<8x128xf32>
    %6 = arith.truncf %5 : vector<8x128xf32> to vector<8x128xbf16>
    %c0_1 = arith.constant 0 : index
    %c0_2 = arith.constant 0 : index
    %7 = vector.load %arg3[%c0_1, %c0_2] : memref<128x128xbf16, #tpu.memory_space<vmem>>, vector<128x128xbf16>
    %cst = arith.constant dense<0.000000e+00> : vector<8x128xf32>
    %8 = tpu.matmul %6, %7, %cst {dimension_numbers = #tpu.dot_dimension_numbers<[1], [0], [0], [1], [0, 0, 1, 1], [], []>} : vector<8x128xbf16>, vector<128x128xbf16>, vector<8x128xf32> -> vector<8x128xf32>
    %c0_3 = arith.constant 0 : index
    %c0_4 = arith.constant 0 : index
    %9 = vector.load %arg2[%c0_3, %c0_4] : memref<8x32xbf16, #tpu.memory_space<vmem>>, vector<8x32xbf16>
    %c0_5 = arith.constant 0 : index
    %c0_6 = arith.constant 0 : index
    %10 = vector.load %arg4[%c0_5, %c0_6] : memref<32x128xbf16, #tpu.memory_space<vmem>>, vector<32x128xbf16>
    %cst_7 = arith.constant dense<0.000000e+00> : vector<8x128xf32>
    %11 = tpu.matmul %9, %10, %cst_7 {dimension_numbers = #tpu.dot_dimension_numbers<[1], [0], [0], [1], [0, 0, 1, 1], [], []>} : vector<8x32xbf16>, vector<32x128xbf16>, vector<8x128xf32> -> vector<8x128xf32>
    %12 = arith.addf %8, %11 : vector<8x128xf32>
    %c0_8 = arith.constant 0 : index
    %c0_9 = arith.constant 0 : index
    %13 = vector.load %arg5[%c0_8, %c0_9] : memref<1x128xf32, #tpu.memory_space<vmem>>, vector<1x128xf32>
    %14 = vector.broadcast %13 : vector<1x128xf32> to vector<8x128xf32>
    %15 = arith.addf %12, %14 : vector<8x128xf32>
    %cst_10 = arith.constant 2.000000e-01 : f32
    %16 = vector.broadcast %cst_10 : f32 to vector<8x128xf32>
    %17 = arith.mulf %16, %15 : vector<8x128xf32>
    %18 = arith.maximumf %15, %17 : vector<8x128xf32>
    %19 = arith.truncf %18 : vector<8x128xf32> to vector<8x128xbf16>
    %c0_11 = arith.constant 0 : index
    %c0_12 = arith.constant 0 : index
    %20 = vector.load %arg6[%c0_11, %c0_12] : memref<128x256xbf16, #tpu.memory_space<vmem>>, vector<128x256xbf16>
    %cst_13 = arith.constant dense<0.000000e+00> : vector<8x256xf32>
    %21 = tpu.matmul %19, %20, %cst_13 {dimension_numbers = #tpu.dot_dimension_numbers<[1], [0], [0], [1], [0, 0, 1, 1], [], []>} : vector<8x128xbf16>, vector<128x256xbf16>, vector<8x256xf32> -> vector<8x256xf32>
    %c0_14 = arith.constant 0 : index
    %c0_15 = arith.constant 0 : index
    %22 = vector.load %arg7[%c0_14, %c0_15] : memref<1x256xf32, #tpu.memory_space<vmem>>, vector<1x256xf32>
    %23 = vector.broadcast %22 : vector<1x256xf32> to vector<8x256xf32>
    %24 = arith.addf %21, %23 : vector<8x256xf32>
    %cst_16 = arith.constant 2.000000e-01 : f32
    %25 = vector.broadcast %cst_16 : f32 to vector<8x256xf32>
    %26 = arith.mulf %25, %24 : vector<8x256xf32>
    %27 = arith.maximumf %24, %26 : vector<8x256xf32>
    %28 = arith.truncf %27 : vector<8x256xf32> to vector<8x256xbf16>
    %c0_17 = arith.constant 0 : index
    %c0_18 = arith.constant 0 : index
    %29 = vector.load %arg8[%c0_17, %c0_18] : memref<256x512xbf16, #tpu.memory_space<vmem>>, vector<256x512xbf16>
    %cst_19 = arith.constant dense<0.000000e+00> : vector<8x512xf32>
    %30 = tpu.matmul %28, %29, %cst_19 {dimension_numbers = #tpu.dot_dimension_numbers<[1], [0], [0], [1], [0, 0, 1, 1], [], []>} : vector<8x256xbf16>, vector<256x512xbf16>, vector<8x512xf32> -> vector<8x512xf32>
    %c0_20 = arith.constant 0 : index
    %c0_21 = arith.constant 0 : index
    %31 = vector.load %arg9[%c0_20, %c0_21] : memref<1x512xf32, #tpu.memory_space<vmem>>, vector<1x512xf32>
    %32 = vector.broadcast %31 : vector<1x512xf32> to vector<8x512xf32>
    %33 = arith.addf %30, %32 : vector<8x512xf32>
    %cst_22 = arith.constant 2.000000e-01 : f32
    %34 = vector.broadcast %cst_22 : f32 to vector<8x512xf32>
    %35 = arith.mulf %34, %33 : vector<8x512xf32>
    %36 = arith.maximumf %33, %35 : vector<8x512xf32>
    %37 = arith.truncf %36 : vector<8x512xf32> to vector<8x512xbf16>
    %c0_23 = arith.constant 0 : index
    %c0_24 = arith.constant 0 : index
    %38 = vector.load %arg10[%c0_23, %c0_24] : memref<512x128xbf16, #tpu.memory_space<vmem>>, vector<512x128xbf16>
    %cst_25 = arith.constant dense<0.000000e+00> : vector<8x128xf32>
    %39 = tpu.matmul %37, %38, %cst_25 {dimension_numbers = #tpu.dot_dimension_numbers<[1], [0], [0], [1], [0, 0, 1, 1], [], []>} : vector<8x512xbf16>, vector<512x128xbf16>, vector<8x128xf32> -> vector<8x128xf32>
    %c0_26 = arith.constant 0 : index
    %c0_27 = arith.constant 0 : index
    %40 = vector.load %arg11[%c0_26, %c0_27] : memref<1x128xf32, #tpu.memory_space<vmem>>, vector<1x128xf32>
    %41 = vector.broadcast %40 : vector<1x128xf32> to vector<8x128xf32>
    %42 = arith.addf %39, %41 : vector<8x128xf32>
    %cst_28 = arith.constant dense<0xFF800000> : vector<8xf32>
    %43 = vector.multi_reduction <maximumf>, %42, %cst_28 [1] : vector<8x128xf32> to vector<8xf32>
    %44 = vector.shape_cast %43 : vector<8xf32> to vector<8x1xf32>
    %45 = vector.broadcast %44 : vector<8x1xf32> to vector<8x128xf32>
    %46 = arith.subf %42, %45 : vector<8x128xf32>
    %47 = math.exp %46 : vector<8x128xf32>
    %cst_29 = arith.constant dense<0.000000e+00> : vector<8xf32>
    %48 = vector.multi_reduction <add>, %47, %cst_29 [1] : vector<8x128xf32> to vector<8xf32>
    %49 = vector.shape_cast %48 : vector<8xf32> to vector<8x1xf32>
    %50 = tpu.reciprocal %49 {approx = true} : vector<8x1xf32> -> vector<8x1xf32>
    %51 = vector.broadcast %50 : vector<8x1xf32> to vector<8x128xf32>
    %52 = arith.mulf %47, %51 : vector<8x128xf32>
    %c0_30 = arith.constant 0 : index
    %c0_31 = arith.constant 0 : index
    %53 = vector.load %arg12[%c0_30, %c0_31] : memref<8x128xf32, #tpu.memory_space<vmem>>, vector<8x128xf32>
    tpu.vector_store %arg12[%c0_30, %c0_31], %52 {strides = array<i32>} : memref<8x128xf32, #tpu.memory_space<vmem>>, vector<8x128xf32>,
    return
  }
  func.func @transform_0(%arg0: i32) -> (i32, i32) {
    %c0_i32 = arith.constant 0 : i32
    %c0_i32_0 = arith.constant 0 : i32
    return %arg0, %c0_i32 : i32, i32
  }
  func.func @transform_1(%arg0: i32) -> (i32, i32) {
    %c0_i32 = arith.constant 0 : i32
    %c0_i32_0 = arith.constant 0 : i32
    return %arg0, %c0_i32 : i32, i32
  }
  func.func @transform_2(%arg0: i32) -> (i32, i32) {
    %c0_i32 = arith.constant 0 : i32
    %c0_i32_0 = arith.constant 0 : i32
    %c0_i32_1 = arith.constant 0 : i32
    return %c0_i32, %c0_i32_0 : i32, i32
  }
  func.func @transform_3(%arg0: i32) -> (i32, i32) {
    %c0_i32 = arith.constant 0 : i32
    %c0_i32_0 = arith.constant 0 : i32
    %c0_i32_1 = arith.constant 0 : i32
    return %c0_i32, %c0_i32_0 : i32, i32
  }
  func.func @transform_4(%arg0: i32) -> (i32, i32) {
    %c0_i32 = arith.constant 0 : i32
    %c0_i32_0 = arith.constant 0 : i32
    %c0_i32_1 = arith.constant 0 : i32
    return %c0_i32, %c0_i32_0 : i32, i32
  }
  func.func @transform_5(%arg0: i32) -> (i32, i32) {
    %c0_i32 = arith.constant 0 : i32
    %c0_i32_0 = arith.constant 0 : i32
    %c0_i32_1 = arith.constant 0 : i32
    return %c0_i32, %c0_i32_0 : i32, i32
  }
  func.func @transform_6(%arg0: i32) -> (i32, i32) {
    %c0_i32 = arith.constant 0 : i32
    %c0_i32_0 = arith.constant 0 : i32
    %c0_i32_1 = arith.constant 0 : i32
    return %c0_i32, %c0_i32_0 : i32, i32
  }
  func.func @transform_7(%arg0: i32) -> (i32, i32) {
    %c0_i32 = arith.constant 0 : i32
    %c0_i32_0 = arith.constant 0 : i32
    %c0_i32_1 = arith.constant 0 : i32
    return %c0_i32, %c0_i32_0 : i32, i32
  }
  func.func @transform_8(%arg0: i32) -> (i32, i32) {
    %c0_i32 = arith.constant 0 : i32
    %c0_i32_0 = arith.constant 0 : i32
    %c0_i32_1 = arith.constant 0 : i32
    return %c0_i32, %c0_i32_0 : i32, i32
  }
  func.func @transform_9(%arg0: i32) -> (i32, i32) {
    %c0_i32 = arith.constant 0 : i32
    %c0_i32_0 = arith.constant 0 : i32
    %c0_i32_1 = arith.constant 0 : i32
    return %c0_i32, %c0_i32_0 : i32, i32
  }
  func.func @transform_10(%arg0: i32) -> (i32, i32) {
    %c0_i32 = arith.constant 0 : i32
    %c0_i32_0 = arith.constant 0 : i32
    %c0_i32_1 = arith.constant 0 : i32
    return %c0_i32, %c0_i32_0 : i32, i32
  }
  func.func @transform_11(%arg0: i32) -> (i32, i32) {
    %c0_i32 = arith.constant 0 : i32
    %c0_i32_0 = arith.constant 0 : i32
    return %arg0, %c0_i32 : i32, i32
  }
}

</mosaic_0001>

<bundles_post_ra>
// kernel: forward.1
= control target key start
LH: loop header
LB: loop body
LE: loop exit
PB: predicated region body
PF: predicated region fallthrough
CT: control target
= control target key end

     0   :  { %16 = vsyncpa [#allocation3], 0  ;;  %s1938_s0 = inlined_call_operand.vmem [shape: s32[8,1], index: 0, kind: input, shape index: {}]   ;;  %s1939_s1 = inlined_call_operand.vmem [shape: bf16[8,32], index: 1, kind: input, shape index: {}]   ;;  %s1940_s2 = inlined_call_operand.hbm [shape: bf16[128,128], index: 2, kind: input, shape index: {}]   ;;  %s1941_s3 = inlined_call_operand.vmem [shape: bf16[32,128], index: 3, kind: input, shape index: {}]   ;;  %s1942_s4 = inlined_call_operand.vmem [shape: f32[1,128], index: 4, kind: input, shape index: {}]   ;;  %s1943_s5 = inlined_call_operand.hbm [shape: bf16[128,256], index: 5, kind: input, shape index: {}]   ;;  %s1944_s6 = inlined_call_operand.vmem [shape: f32[1,256], index: 6, kind: input, shape index: {}]   ;;  %s1945_s7 = inlined_call_operand.hbm [shape: bf16[256,512], index: 7, kind: input, shape index: {}]   ;;  %s1946_s8 = inlined_call_operand.vmem [shape: f32[1,512], index: 8, kind: input, shape index: {}]   ;;  %s1947_s9 = inlined_call_operand.hbm [shape: bf16[512,128], index: 9, kind: input, shape index: {}]   ;;  %s1948_s10 = inlined_call_operand.vmem [shape: f32[1,128], index: 10, kind: input, shape index: {}]   ;;  %s1949_s11 = inlined_call_operand.hbm [shape: f32[8,128], index: 11, kind: output, shape index: {}]  }
   0x1   :  { %17 = vsyncpa [#allocation6], 0 }
   0x2   :  { %18 = vsyncpa [#allocation9], 0 }
   0x3   :  { %19 = vsyncpa [#allocation4], 0  ;;  %s1808_s17 = smov [#allocation5]  }
   0x4   :  { %s45_s18 = sshll.u32 %s1808_s17, 4  ;;  %s46_s18 = int_to_ptr.vmem [resolvable:$true] %s45_s18 }
   0x5   :  { %s1708_s19 = scalar_lea.vmem %s46_s18, 2048  ;;  %p1713_p1 = scmp.lt.s32.totalorder %s46_s18, %s46_s18 }
   0x6   :  { %p1709_p0 = scmp.ne.s32.totalorder %s46_s18, %s1708_s19  ;;  %p1714_p2 = scmp.lt.s32.totalorder %s1708_s19, %s1708_s19 }
   0x8   :  { %p1715_p3 = por %p1714_p2, %p1713_p1 }
   0xa   :  { %p1716_p4 = pnand %p1715_p3, %p1709_p0 }
   0xc   :  { %1719 = shalt.err (!%p1716_p4)
}
   0xd   :  { %s1809_s20 = smov 128   ;;  %s1810_s21 = smov 8  }
   0xe   :  { %51 = dma.hbm_to_vmem [thread:$0]  %s1943_s5, 2048, %s46_s18, [#allocation6], %s1809_s20, %s1809_s20, %s1810_s21  }
   0xf   :  { %s1811_s24 = smov [#allocation2]  }
  0x10   :  { %s29_s25 = sshll.u32 %s1811_s24, 4  ;;  %s30_s25 = int_to_ptr.vmem [resolvable:$true] %s29_s25 }
  0x11   :  { %s1728_s26 = scalar_lea.vmem %s30_s25, 1024  ;;  %p1733_p6 = scmp.lt.s32.totalorder %s30_s25, %s30_s25 }
  0x12   :  { %p1729_p5 = scmp.ne.s32.totalorder %s30_s25, %s1728_s26  ;;  %p1734_p7 = scmp.lt.s32.totalorder %s1728_s26, %s1728_s26 }
  0x14   :  { %p1735_p8 = por %p1734_p7, %p1733_p6 }
  0x16   :  { %p1736_p9 = pnand %p1735_p8, %p1729_p5 }
  0x18   :  { %1739 = shalt.err (!%p1736_p9)
}
  0x19   :  { %s1812_s27 = smov 64   ;;  %s1813_s28 = smov 4  }
  0x1a   :  { %35 = dma.hbm_to_vmem [thread:$0]  %s1940_s2, 1024, %s30_s25, [#allocation3], %s1812_s27, %s1812_s27, %s1813_s28  }
  0x1b   :  { %s1814_s12 = smov [#allocation7]  }
  0x1c   :  { %s59_s13 = sshll.u32 %s1814_s12, 4  ;;  %s60_s13 = int_to_ptr.vmem [resolvable:$true] %s59_s13 }
  0x1d   :  { %s1748_s5 = scalar_lea.vmem %s60_s13, 8192  ;;  %p1753_p11 = scmp.lt.s32.totalorder %s60_s13, %s60_s13 }
  0x1e   :  { %p1749_p10 = scmp.ne.s32.totalorder %s60_s13, %s1748_s5  ;;  %p1754_p12 = scmp.lt.s32.totalorder %s1748_s5, %s1748_s5 }
  0x20   :  { %p1755_p13 = por %p1754_p12, %p1753_p11 }
  0x22   :  { %p1756_p0 = pnand %p1755_p13, %p1749_p10 }
  0x24   :  { %1759 = shalt.err (!%p1756_p0)
}
  0x25   :  { %s1815_s14 = smov 256   ;;  %s1816_s15 = smov 16  }
  0x26   :  { %65 = dma.hbm_to_vmem [thread:$0]  %s1945_s7, 8192, %s60_s13, [#allocation6], %s1815_s14, %s1815_s14, %s1816_s15  }
  0x27   :  { %s1817_s18 = smov [#allocation8]  }
  0x28   :  { %s73_s19 = sshll.u32 %s1817_s18, 4  ;;  %s74_s19 = int_to_ptr.vmem [resolvable:$true] %s73_s19 }
  0x29   :  { %s1768_s2 = scalar_lea.vmem %s74_s19, 4096  ;;  %p1773_p2 = scmp.lt.s32.totalorder %s74_s19, %s74_s19 }
  0x2a   :  { %p1769_p1 = scmp.ne.s32.totalorder %s74_s19, %s1768_s2  ;;  %p1774_p3 = scmp.lt.s32.totalorder %s1768_s2, %s1768_s2 }
  0x2c   :  { %p1775_p4 = por %p1774_p3, %p1773_p2 }
  0x2e   :  { %p1776_p5 = pnand %p1775_p4, %p1769_p1 }
  0x30   :  { %1779 = shalt.err (!%p1776_p5)
}
  0x31   :  { %79 = dma.hbm_to_vmem [thread:$0]  %s1947_s9, 4096, %s74_s19, [#allocation9], %s1812_s27, %s1812_s27, %s1813_s28  }
  0x32   :  { %1800 = dma.done.wait [#allocation3], 1024  }
  0x33   :  { %1801 = vsyncadd [#allocation3], 4294966272 }
  0x34   :  { %1802 = dma.done.wait [#allocation6], 10240  }
  0x35   :  { %1803 = vsyncadd [#allocation6], 4294957056 }
  0x36   :  { %1804 = dma.done.wait [#allocation9], 4096  }
  0x37   :  { %1805 = vsyncadd [#allocation9], 4294963200  ;;  %v1818_v0 = vmov 0   ;;  %v1819_v1 = vmov 0.0   ;;  %vm1820_vm0 = vmmov 0   ;;  %v95_v2 = vld [vmem:[%s1938_s0] sm:$0xff]  ;;  %v96_v26 = vlaneseq }
  0x38   :  { %1533 = vset.pattern.permute.xlu0 %v1818_v0  ;;  %1498 = vmatprep.subr.bf16.mxu1 %v1819_v1  ;;  %v1534_v3 = vld [vmem:[#allocation2 + $0x38] sm:$0xff]   ;;  %v1535_v4 = vld [vmem:[#allocation2 + $0x30] sm:$0xff]   ;;  %v1539_v5 = vld [vmem:[%s1941_s3 + $0x8] sm:$0xff]   ;;  %vm138_vm1 = vcmask 261120   ;;  %v1821_v29 = vmov 1.0|1.0  }
  0x39   :  { %1490 = vmatprep.subr.bf16.mxu0 %v1819_v1  ;;  %1494 = vmatprep.mubr.msk.bf16.mxu0 %vm1820_vm0, %v1819_v1  ;;  %v1536_v6 = vld [vmem:[#allocation2 + $0x28] sm:$0xff]   ;;  %v1541_v7 = vld [vmem:[%s1941_s3] sm:$0xff]   ;;  %v1546_v10 = vld [vmem:[#allocation5 + $0x74] ss:$8 sps:$4 sm:$0xff]   ;;  %v97_v27 = vand.u32 127, %v96_v26 }
  0x3a   :  { %1514 = vmatprep.mubr.msk.bf16.mxu1 %vm1820_vm0, %v1819_v1  ;;  %99 = vperm.xlu0 %1533, %v95_v2   ;;  %v1537_v8 = vld [vmem:[#allocation2 + $0x20] sm:$0xff]   ;;  %v1544_v11 = vld [vmem:[#allocation5 + $0x70] ss:$8 sps:$4 sm:$0xff]   ;;  %v1552_v15 = vld [vmem:[#allocation5 + $0x54] ss:$8 sps:$4 sm:$0xff]  }
  0x3b   :  { %1499 = vmatpush3.bf16.msra.mxu1 %v1534_v3  ;;  %1491 = vmatpush3.bf16.msra.mxu0 %v1539_v5  ;;  %v121_v9 = vld [vmem:[%s1939_s1] sm:$0xf]  ;;  %v1549_v12 = vld [vmem:[#allocation5 + $0x64] ss:$8 sps:$4 sm:$0xff]   ;;  %v1538_v13 = vld [vmem:[#allocation2 + $0x18] sm:$0xff]  }
  0x3c   :  { %1500 = vmatprep.subr.bf16.mxu1 %v1819_v1  ;;  %1492 = vmatprep.subr.bf16.mxu0 %v1819_v1  ;;  %v1547_v14 = vld [vmem:[#allocation5 + $0x60] ss:$8 sps:$4 sm:$0xff]   ;;  %v1540_v16 = vld [vmem:[#allocation2 + $0x10] sm:$0xff]   ;;  %v1555_v18 = vld [vmem:[#allocation5 + $0x44] ss:$8 sps:$4 sm:$0xff]  }
  0x3d   :  { %v1550_v17 = vld [vmem:[#allocation5 + $0x50] ss:$8 sps:$4 sm:$0xff]   ;;  %v1542_v19 = vld [vmem:[#allocation2 + $0x8] sm:$0xff]   ;;  %v1543_v21 = vld [vmem:[#allocation2] sm:$0xff]  }
  0x3e   :  { %v1553_v20 = vld [vmem:[#allocation5 + $0x40] ss:$8 sps:$4 sm:$0xff]   ;;  %v1556_v22 = vld [vmem:[#allocation5 + $0x30] ss:$8 sps:$4 sm:$0xff]   ;;  %v1558_v23 = vld [vmem:[#allocation5 + $0x34] ss:$8 sps:$4 sm:$0xff]  }
  0x3f   :  { %1501 = vmatpush3.bf16.msra.mxu1 %v1535_v4  ;;  %1493 = vmatpush3.bf16.msra.mxu0 %v1541_v7  ;;  %v1559_v24 = vld [vmem:[#allocation5 + $0x20] ss:$8 sps:$4 sm:$0xff]   ;;  %v1561_v25 = vld [vmem:[#allocation5 + $0x24] ss:$8 sps:$4 sm:$0xff]   ;;  %v1564_v30 = vld [vmem:[#allocation5 + $0x14] ss:$8 sps:$4 sm:$0xff]  }
  0x40   :  { %1502 = vmatprep.subr.bf16.mxu1 %v1819_v1  ;;  %389 = vmatprep.subr.bf16.mxu0 %v1546_v10  ;;  %v1562_v31 = vld [vmem:[#allocation5 + $0x10] ss:$8 sps:$4 sm:$0xff]   ;;  %v1567_v32 = vld [vmem:[#allocation5 + $0x4] ss:$8 sps:$4 sm:$0xff]   ;;  %v1565_v33 = vld [vmem:[#allocation5] ss:$8 sps:$4 sm:$0xff]  }
  0x41   :  { %v1568_v34 = vld [vmem:[#allocation7 + $0xe0] ss:$16 sps:$4 sm:$0xff]   ;;  %v1570_v35 = vld [vmem:[#allocation7 + $0xe4] ss:$16 sps:$4 sm:$0xff]   ;;  %v1573_v36 = vld [vmem:[#allocation7 + $0xec] ss:$16 sps:$4 sm:$0xff]  }
  0x42   :  { %1495 = vmatmul.mubr.msk.bf16.vlgmr.msra.gmra.mxu0 %vm138_vm1, %v121_v9  ;;  %v1576_v37 = vld [vmem:[#allocation7 + $0xc4] ss:$16 sps:$4 sm:$0xff]   ;;  %v1574_v38 = vld [vmem:[#allocation7 + $0xc0] ss:$16 sps:$4 sm:$0xff]   ;;  %v1571_v10 = vld [vmem:[#allocation7 + $0xe8] ss:$16 sps:$4 sm:$0xff]  }
  0x43   :  { %1503 = vmatpush3.bf16.msra.mxu1 %v1536_v6  ;;  %390 = vmatpush1.bf16.msra.mxu0 %v1544_v11  ;;  %v1582_v40 = vld [vmem:[#allocation7 + $0xa4] ss:$16 sps:$4 sm:$0xff]   ;;  %v1580_v42 = vld [vmem:[#allocation7 + $0xa0] ss:$16 sps:$4 sm:$0xff]  }
  0x44   :  { %1504 = vmatprep.subr.bf16.mxu1 %v1819_v1  ;;  %391 = vmatprep.subr.bf16.mxu0 %v1549_v12  ;;  %v1588_v44 = vld [vmem:[#allocation7 + $0x84] ss:$16 sps:$4 sm:$0xff]   ;;  %v1586_v46 = vld [vmem:[#allocation7 + $0x80] ss:$16 sps:$4 sm:$0xff]   ;;  %v1579_v12 = vld [vmem:[#allocation7 + $0xcc] ss:$16 sps:$4 sm:$0xff]  }
  0x45   :  { %421 = vmatprep.mubr.bf16.mxu0 %v1818_v0  ;;  %v1594_v47 = vld [vmem:[#allocation7 + $0x64] ss:$16 sps:$4 sm:$0xff]   ;;  %v1592_v48 = vld [vmem:[#allocation7 + $0x60] ss:$16 sps:$4 sm:$0xff]  }
  0x46   :  { %v1600_v49 = vld [vmem:[#allocation7 + $0x44] ss:$16 sps:$4 sm:$0xff]   ;;  %v1598_v50 = vld [vmem:[#allocation7 + $0x40] ss:$16 sps:$4 sm:$0xff]  }
  0x47   :  { %1505 = vmatpush3.bf16.msra.mxu1 %v1537_v8  ;;  %392 = vmatpush1.bf16.msra.mxu0 %v1547_v14  ;;  %v1606_v51 = vld [vmem:[#allocation7 + $0x24] ss:$16 sps:$4 sm:$0xff]   ;;  %v1604_v52 = vld [vmem:[#allocation7 + $0x20] ss:$16 sps:$4 sm:$0xff]   ;;  %v1585_v14 = vld [vmem:[#allocation7 + $0xac] ss:$16 sps:$4 sm:$0xff]  }
  0x48   :  { %1506 = vmatprep.subr.bf16.mxu1 %v1819_v1  ;;  %393 = vmatprep.subr.bf16.mxu0 %v1552_v15  ;;  %v1612_v53 = vld [vmem:[#allocation7 + $0x4] ss:$16 sps:$4 sm:$0xff]   ;;  %v1610_v54 = vld [vmem:[#allocation7] ss:$16 sps:$4 sm:$0xff]   ;;  %v1583_v15 = vld [vmem:[#allocation7 + $0xa8] ss:$16 sps:$4 sm:$0xff]  }
  0x49   :  { %v1618_v55 = vld [vmem:[#allocation7 + $0x1e4] ss:$16 sps:$4 sm:$0xff]   ;;  %v1616_v56 = vld [vmem:[#allocation7 + $0x1e0] ss:$16 sps:$4 sm:$0xff]  }
  0x4a   :  { %v1624_v57 = vld [vmem:[#allocation7 + $0x1c4] ss:$16 sps:$4 sm:$0xff]   ;;  %v1622_v58 = vld [vmem:[#allocation7 + $0x1c0] ss:$16 sps:$4 sm:$0xff]  }
  0x4b   :  { %1507 = vmatpush3.bf16.msra.mxu1 %v1538_v13  ;;  %394 = vmatpush1.bf16.msra.mxu0 %v1550_v17  ;;  %v1630_v59 = vld [vmem:[#allocation7 + $0x1a4] ss:$16 sps:$4 sm:$0xff]   ;;  %v1628_v60 = vld [vmem:[#allocation7 + $0x1a0] ss:$16 sps:$4 sm:$0xff]   ;;  %v1577_v13 = vld [vmem:[#allocation7 + $0xc8] ss:$16 sps:$4 sm:$0xff]  }
  0x4c   :  { %1508 = vmatprep.subr.bf16.mxu1 %v1819_v1  ;;  %395 = vmatprep.subr.bf16.mxu0 %v1555_v18  ;;  %v1636_v61 = vld [vmem:[#allocation7 + $0x184] ss:$16 sps:$4 sm:$0xff]   ;;  %v1634_v62 = vld [vmem:[#allocation7 + $0x180] ss:$16 sps:$4 sm:$0xff]   ;;  %v1589_v17 = vld [vmem:[#allocation7 + $0x88] ss:$16 sps:$4 sm:$0xff]  }
  0x4d   :  { %v1642_v63 = vld [vmem:[#allocation7 + $0x164] ss:$16 sps:$4 sm:$0xff]   ;;  %v1640_v0 = vld [vmem:[#allocation7 + $0x160] ss:$16 sps:$4 sm:$0xff]   ;;  %v1597_v18 = vld [vmem:[#allocation7 + $0x6c] ss:$16 sps:$4 sm:$0xff]  }
  0x4e   :  { %v1320_v2 = vld [vmem:[%s1942_s4] ss:$0 sm:$0xff] }
  0x4f   :  { %1509 = vmatpush3.bf16.msra.mxu1 %v1540_v16  ;;  %396 = vmatpush1.bf16.msra.mxu0 %v1553_v20  ;;  %v1591_v16 = vld [vmem:[#allocation7 + $0x8c] ss:$16 sps:$4 sm:$0xff]  }
  0x50   :  { %1510 = vmatprep.subr.bf16.mxu1 %v1819_v1  ;;  %397 = vmatprep.subr.bf16.mxu0 %v1558_v23  ;;  %v1603_v20 = vld [vmem:[#allocation7 + $0x4c] ss:$16 sps:$4 sm:$0xff]   ;;  %v1607_v23 = vld [vmem:[#allocation7 + $0x28] ss:$16 sps:$4 sm:$0xff]  }
  0x53   :  { %1511 = vmatpush3.bf16.msra.mxu1 %v1542_v19  ;;  %398 = vmatpush1.bf16.msra.mxu0 %v1556_v22  ;;  %v1595_v19 = vld [vmem:[#allocation7 + $0x68] ss:$16 sps:$4 sm:$0xff]   ;;  %v1609_v22 = vld [vmem:[#allocation7 + $0x2c] ss:$16 sps:$4 sm:$0xff]  }
  0x54   :  { %1512 = vmatprep.subr.bf16.mxu1 %v1819_v1  ;;  %399 = vmatprep.subr.bf16.mxu0 %v1561_v25  ;;  %v1613_v25 = vld [vmem:[#allocation7 + $0x8] ss:$16 sps:$4 sm:$0xff]  }
  0x57   :  { %1513 = vmatpush3.bf16.msra.mxu1 %v1543_v21  ;;  %400 = vmatpush1.bf16.msra.mxu0 %v1559_v24  ;;  %v1601_v21 = vld [vmem:[#allocation7 + $0x48] ss:$16 sps:$4 sm:$0xff]   ;;  %v1615_v24 = vld [vmem:[#allocation7 + $0xc] ss:$16 sps:$4 sm:$0xff]  }
  0x58   :  { %401 = vmatprep.subr.bf16.mxu0 %v1564_v30  ;;  %842 = vmatprep.subr.bf16.mxu1 %v1570_v35  ;;  %v1625_v30 = vld [vmem:[#allocation7 + $0x1c8] ss:$16 sps:$4 sm:$0xff]   ;;  %v1645_v35 = vld [vmem:[#allocation7 + $0x16c] ss:$16 sps:$4 sm:$0xff]  }
  0x5b   :  { %402 = vmatpush1.bf16.msra.mxu0 %v1562_v31  ;;  %v1633_v31 = vld [vmem:[#allocation7 + $0x1ac] ss:$16 sps:$4 sm:$0xff]  }
  0x5c   :  { %403 = vmatprep.subr.bf16.mxu0 %v1567_v32  ;;  %v1631_v32 = vld [vmem:[#allocation7 + $0x1a8] ss:$16 sps:$4 sm:$0xff]  }
  0x5f   :  { %404 = vmatpush1.bf16.msra.mxu0 %v1565_v33  ;;  %v1639_v33 = vld [vmem:[#allocation7 + $0x18c] ss:$16 sps:$4 sm:$0xff]  }
  0x60   :  { %883 = vmatprep.subr.bf16.mxu0 %v1573_v36  ;;  %v1643_v36 = vld [vmem:[#allocation7 + $0x168] ss:$16 sps:$4 sm:$0xff]  }
  0xb5   :  { %v100_v28 = vpop.permute.xlu0 %99 }
  0xb6   :  { %vm101_vm2 = vcmp.eq.s32.totalorder %v97_v27, %v100_v28  ;;  %v1621_v27 = vld [vmem:[#allocation7 + $0x1ec] ss:$16 sps:$4 sm:$0xff]   ;;  %v1619_v28 = vld [vmem:[#allocation7 + $0x1e8] ss:$16 sps:$4 sm:$0xff]  }
  0xb7   :  { %vm1318_vm3 = vmpackc.low %vm101_vm2, %vm101_vm2 }
  0xb8   :  { %1515 = vmatmul.mubr.msk.bf16.vlgmr.msra.gmra.mxu1 %vm1318_vm3, %v1821_v29  ;;  %v1627_v29 = vld [vmem:[#allocation7 + $0x1cc] ss:$16 sps:$4 sm:$0xff]  }
  0xb9   :  { %843 = vmatpush1.bf16.msra.mxu1 %v1568_v34  ;;  %v1637_v34 = vld [vmem:[#allocation7 + $0x188] ss:$16 sps:$4 sm:$0xff]  }
  0xba   :  { %844 = vmatprep.subr.bf16.mxu1 %v1576_v37  ;;  %v1648_v37 = vld [vmem:[#allocation7 + $0x144] ss:$16 sps:$4 sm:$0xff]  }
  0xbd   :  { %845 = vmatpush1.bf16.msra.mxu1 %v1574_v38  ;;  %v1651_v38 = vld [vmem:[#allocation7 + $0x14c] ss:$16 sps:$4 sm:$0xff]  }
  0xbe   :  { %846 = vmatprep.subr.bf16.mxu1 %v1582_v40  ;;  %v1649_v40 = vld [vmem:[#allocation7 + $0x148] ss:$16 sps:$4 sm:$0xff]  }
  0xc1   :  { %847 = vmatpush1.bf16.msra.mxu1 %v1580_v42  ;;  %v1657_v42 = vld [vmem:[#allocation7 + $0x12c] ss:$16 sps:$4 sm:$0xff]  }
  0xc2   :  { %848 = vmatprep.subr.bf16.mxu1 %v1588_v44  ;;  %v1655_v44 = vld [vmem:[#allocation7 + $0x128] ss:$16 sps:$4 sm:$0xff]  }
  0xc5   :  { %849 = vmatpush1.bf16.msra.mxu1 %v1586_v46  ;;  %v1663_v46 = vld [vmem:[#allocation7 + $0x10c] ss:$16 sps:$4 sm:$0xff]  }
  0xc6   :  { %850 = vmatprep.subr.bf16.mxu1 %v1594_v47  ;;  %v1658_v47 = vld [vmem:[#allocation7 + $0x100] ss:$16 sps:$4 sm:$0xff]  }
  0xc9   :  { %851 = vmatpush1.bf16.msra.mxu1 %v1592_v48  ;;  %v1661_v48 = vld [vmem:[#allocation7 + $0x108] ss:$16 sps:$4 sm:$0xff]  }
  0xca   :  { %852 = vmatprep.subr.bf16.mxu1 %v1600_v49  ;;  %v1664_v49 = vld [vmem:[#allocation8 + $0x78] sm:$0xff]  }
  0xcd   :  { %853 = vmatpush1.bf16.msra.mxu1 %v1598_v50  ;;  %v1665_v50 = vld [vmem:[#allocation8 + $0xf8] sm:$0xff]  }
  0xce   :  { %854 = vmatprep.subr.bf16.mxu1 %v1606_v51  ;;  %v1912_v51 = vshrl.u32 %v96_v26, 7 }
  0xd1   :  { %855 = vmatpush1.bf16.msra.mxu1 %v1604_v52  ;;  %v301_v52 = vsub.s32 0, %v1912_v51 }
  0xd2   :  { %856 = vmatprep.subr.bf16.mxu1 %v1612_v53  ;;  %v297_v53 = vld [vmem:[%s1944_s6] sm:$0x3] }
  0xd5   :  { %857 = vmatpush1.bf16.msra.mxu1 %v1610_v54  ;;  %v305_v54 = vsub.s32 1, %v1912_v51 }
  0xd6   :  { %858 = vmatprep.subr.bf16.mxu1 %v1618_v55  ;;  %v302_v55 = vrot.slane %v297_v53, %v301_v52 }
  0xd9   :  { %859 = vmatpush2.bf16.msra.mxu1 %v1616_v56  ;;  %v306_v56 = vrot.slane %v297_v53, %v305_v54 }
  0xda   :  { %860 = vmatprep.subr.bf16.mxu1 %v1624_v57 }
  0xdd   :  { %861 = vmatpush2.bf16.msra.mxu1 %v1622_v58 }
  0xde   :  { %862 = vmatprep.subr.bf16.mxu1 %v1630_v59 }
  0xe1   :  { %863 = vmatpush2.bf16.msra.mxu1 %v1628_v60 }
  0xe2   :  { %864 = vmatprep.subr.bf16.mxu1 %v1636_v61 }
  0xe5   :  { %865 = vmatpush2.bf16.msra.mxu1 %v1634_v62 }
  0xe6   :  { %866 = vmatprep.subr.bf16.mxu1 %v1642_v63 }
  0xe9   :  { %867 = vmatpush2.bf16.msra.mxu1 %v1640_v0 }
  0xea   :  { %868 = vmatprep.subr.bf16.mxu1 %v1648_v37  ;;  %v516_v37 = vsub.s32 3, %v1912_v51 }
 0x102   :  { %v176_v39 = vpop.f32.mrf.mxu0 }
 0x104   :  { %v1496_v41 = vpop.f32.mrf.mxu0 }
 0x105   :  { %v1654_v41 = vld [vmem:[#allocation7 + $0x124] ss:$16 sps:$4 sm:$0xff]  }
 0x106   :  { %v179_v43 = vpop.f32.mrf.mxu0 }
 0x107   :  { %v1652_v43 = vld [vmem:[#allocation7 + $0x120] ss:$16 sps:$4 sm:$0xff]  }
 0x108   :  { %v1497_v45 = vpop.f32.mrf.mxu0 }
 0x109   :  { %v1660_v45 = vld [vmem:[#allocation7 + $0x104] ss:$16 sps:$4 sm:$0xff]  }
 0x178   :  { %v264_v1 = vpop.f32.mrf.mxu1 }
 0x179   :  { %v265_v3 = vadd.f32 %v264_v1, %v176_v39  ;;  %v1646_v39 = vld [vmem:[#allocation7 + $0x140] ss:$16 sps:$4 sm:$0xff]  }
 0x17a   :  { %v1516_v4 = vpop.f32.mrf.mxu1  ;;  %869 = vmatpush2.bf16.msra.mxu1 %v1646_v39 }
 0x17b   :  { %v277_v5 = vadd.f32 %v1320_v2, %v265_v3  ;;  %870 = vmatprep.subr.bf16.mxu1 %v1654_v41  ;;  %v1666_v3 = vld [vmem:[#allocation8 + $0x38] sm:$0xff]  }
 0x17c   :  { %v267_v6 = vpop.f32.mrf.mxu1  ;;  %v1667_v4 = vld [vmem:[#allocation8 + $0xb8] sm:$0xff]  }
 0x17d   :  { %v278_v7 = vmul.f32 0.2, %v277_v5  ;;  %v1668_v6 = vld [vmem:[#allocation8 + $0x70] sm:$0xff]  }
 0x17e   :  { %v1517_v8 = vpop.f32.mrf.mxu1  ;;  %871 = vmatpush2.bf16.msra.mxu1 %v1652_v43 }
 0x17f   :  { %v279_v9 = vmax.f32 %v277_v5, %v278_v7  ;;  %872 = vmatprep.subr.bf16.mxu1 %v1660_v45  ;;  %v1669_v7 = vld [vmem:[#allocation8 + $0xf0] sm:$0xff]  }
 0x180   :  { %v1670_v8 = vld [vmem:[#allocation8 + $0x30] sm:$0xff]  }
 0x181   :  { %v280_v11 = vpack.c.bf16 %v279_v9, %v279_v9  ;;  %v1671_v9 = vld [vmem:[#allocation8 + $0xb0] sm:$0xff]  }
 0x182   :  { %873 = vmatpush2.bf16.msra.mxu1 %v1658_v47 }
 0x183   :  { %422 = vmatmul.mubr.bf16.vlgmr.msra.gmra.mxu0 %v280_v11  ;;  %1446 = vmatprep.subr.bf16.mxu1 %v1664_v49  ;;  %v1673_v11 = vld [vmem:[#allocation8 + $0xe8] sm:$0xff]  }
 0x184   :  { %884 = vmatpush1.bf16.msra.mxu0 %v1571_v10  ;;  %v1672_v10 = vld [vmem:[#allocation8 + $0x68] sm:$0xff]  }
 0x185   :  { %885 = vmatprep.subr.bf16.mxu0 %v1579_v12  ;;  %v1674_v12 = vld [vmem:[#allocation8 + $0x28] sm:$0xff]  }
 0x188   :  { %886 = vmatpush1.bf16.msra.mxu0 %v1577_v13  ;;  %v1675_v13 = vld [vmem:[#allocation8 + $0xa8] sm:$0xff]  }
 0x189   :  { %887 = vmatprep.subr.bf16.mxu0 %v1585_v14  ;;  %v1676_v14 = vld [vmem:[#allocation8 + $0x60] sm:$0xff]  }
 0x18c   :  { %888 = vmatpush1.bf16.msra.mxu0 %v1583_v15  ;;  %v1677_v15 = vld [vmem:[#allocation8 + $0xe0] sm:$0xff]  }
 0x18d   :  { %889 = vmatprep.subr.bf16.mxu0 %v1591_v16  ;;  %v1678_v16 = vld [vmem:[#allocation8 + $0x20] sm:$0xff]  }
 0x190   :  { %890 = vmatpush1.bf16.msra.mxu0 %v1589_v17  ;;  %v1679_v17 = vld [vmem:[#allocation8 + $0xa0] sm:$0xff]  }
 0x191   :  { %891 = vmatprep.subr.bf16.mxu0 %v1597_v18  ;;  %v1680_v18 = vld [vmem:[#allocation8 + $0x58] sm:$0xff]  }
 0x194   :  { %892 = vmatpush1.bf16.msra.mxu0 %v1595_v19  ;;  %v1681_v19 = vld [vmem:[#allocation8 + $0xd8] sm:$0xff]  }
 0x195   :  { %893 = vmatprep.subr.bf16.mxu0 %v1603_v20  ;;  %v1682_v20 = vld [vmem:[#allocation8 + $0x18] sm:$0xff]  }
 0x198   :  { %894 = vmatpush1.bf16.msra.mxu0 %v1601_v21  ;;  %v1683_v21 = vld [vmem:[#allocation8 + $0x98] sm:$0xff]  }
 0x199   :  { %895 = vmatprep.subr.bf16.mxu0 %v1609_v22  ;;  %v1684_v22 = vld [vmem:[#allocation8 + $0x50] sm:$0xff]  }
 0x19c   :  { %896 = vmatpush1.bf16.msra.mxu0 %v1607_v23  ;;  %v1685_v23 = vld [vmem:[#allocation8 + $0xd0] sm:$0xff]  }
 0x19d   :  { %897 = vmatprep.subr.bf16.mxu0 %v1615_v24  ;;  %v1686_v24 = vld [vmem:[#allocation8 + $0x10] sm:$0xff]  }
 0x1a0   :  { %898 = vmatpush1.bf16.msra.mxu0 %v1613_v25  ;;  %v1687_v25 = vld [vmem:[#allocation8 + $0x90] sm:$0xff]  }
 0x1a1   :  { %899 = vmatprep.subr.bf16.mxu0 %v1621_v27  ;;  %v1688_v27 = vld [vmem:[#allocation8 + $0x48] sm:$0xff]  }
 0x1a4   :  { %900 = vmatpush2.bf16.msra.mxu0 %v1619_v28  ;;  %v1689_v28 = vld [vmem:[#allocation8 + $0xc8] sm:$0xff]  }
 0x1a5   :  { %901 = vmatprep.subr.bf16.mxu0 %v1627_v29  ;;  %v1690_v29 = vld [vmem:[#allocation8 + $0x8] sm:$0xff]  }
 0x1a8   :  { %902 = vmatpush2.bf16.msra.mxu0 %v1625_v30  ;;  %v1691_v30 = vld [vmem:[#allocation8 + $0x88] sm:$0xff]  }
 0x1a9   :  { %903 = vmatprep.subr.bf16.mxu0 %v1633_v31  ;;  %v1692_v31 = vld [vmem:[#allocation8 + $0x40] sm:$0xff]  }
 0x1ac   :  { %904 = vmatpush2.bf16.msra.mxu0 %v1631_v32  ;;  %v1693_v32 = vld [vmem:[#allocation8 + $0xc0] sm:$0xff]  }
 0x1ad   :  { %905 = vmatprep.subr.bf16.mxu0 %v1639_v33  ;;  %v1694_v33 = vld [vmem:[#allocation8] sm:$0xff]  }
 0x1b0   :  { %906 = vmatpush2.bf16.msra.mxu0 %v1637_v34  ;;  %v1695_v34 = vld [vmem:[#allocation8 + $0x80] sm:$0xff]  }
 0x1b1   :  { %907 = vmatprep.subr.bf16.mxu0 %v1645_v35  ;;  %v512_v35 = vsub.s32 2, %v1912_v51 }
 0x1b4   :  { %908 = vmatpush2.bf16.msra.mxu0 %v1643_v36  ;;  %v500_v36 = vld [vmem:[%s1946_s8] sm:$0xf] }
 0x1b5   :  { %909 = vmatprep.subr.bf16.mxu0 %v1651_v38  ;;  %v505_v38 = vrot.slane %v500_v36, %v301_v52  ;;  %v513_v39 = vrot.slane %v500_v36, %v512_v35  ;;  %v517_v41 = vrot.slane %v500_v36, %v516_v37 }
 0x1b8   :  { %910 = vmatpush2.bf16.msra.mxu0 %v1649_v40  ;;  %v509_v40 = vrot.slane %v500_v36, %v305_v54 }
 0x1b9   :  { %911 = vmatprep.subr.bf16.mxu0 %v1657_v42 }
 0x1bc   :  { %912 = vmatpush2.bf16.msra.mxu0 %v1655_v44 }
 0x1bd   :  { %913 = vmatprep.subr.bf16.mxu0 %v1663_v46 }
 0x1c0   :  { %914 = vmatpush2.bf16.msra.mxu0 %v1661_v48 }
 0x1c1   :  { %1468 = vmatprep.subr.bf16.mxu0 %v1665_v50 }
 0x243   :  { %v423_v57 = vpop.f32.mrf.mxu0 }
 0x244   :  { %v424_v58 = vadd.f32 %v423_v57, %v302_v55 }
 0x245   :  { %v425_v59 = vpop.f32.mrf.mxu0 }
 0x246   :  { %v430_v60 = vmul.f32 0.2, %v424_v58  ;;  %v426_v26 = vadd.f32 %v425_v59, %v306_v56 }
 0x247   :  { %v427_v61 = vpop.f32.mrf.mxu0 }
 0x248   :  { %v431_v62 = vmul.f32 0.2, %v426_v26  ;;  %v432_v63 = vmax.f32 %v424_v58, %v430_v60 }
 0x249   :  { %v428_v0 = vpop.f32.mrf.mxu0 }
 0x24a   :  { %v433_v1 = vmax.f32 %v426_v26, %v431_v62  ;;  %v434_v5 = vpack.c.bf16 %v432_v63, %v432_v63 }
 0x24c   :  { %v435_v2 = vpack.c.bf16 %v433_v1, %v433_v1 }
 0x24e   :  { %874 = vmatprep.mubr.bf16.mxu1 %v435_v2  ;;  %915 = vmatprep.mubr.bf16.mxu0 %v435_v2 }
 0x24f   :  { %875 = vmatmul.mubr.bf16.vlgmr.msra.gmra.mxu1 %v434_v5  ;;  %916 = vmatmul.mubr.bf16.vlgmr.msra.gmra.mxu0 %v434_v5 }
 0x250   :  { %1447 = vmatpush3.bf16.msra.mxu1 %v1666_v3  ;;  %1469 = vmatpush3.bf16.msra.mxu0 %v1667_v4  ;;  %v1401_v3 = vld [vmem:[%s1948_s10] ss:$0 sm:$0xff]  ;;  %s1822_s10 = smov [#allocation10]  }
 0x251   :  { %1448 = vmatprep.subr.bf16.mxu1 %v1668_v6  ;;  %1470 = vmatprep.subr.bf16.mxu0 %v1669_v7  ;;  %s1295_s30 = sshll.u32 %s1822_s10, 4  ;;  %s1296_s30 = int_to_ptr.vmem [resolvable:$true] %s1295_s30 }
 0x252   :  { %s1780_s12 = scalar_lea.vmem %s1296_s30, 128  ;;  %p1785_p7 = scmp.lt.s32.totalorder %s1296_s30, %s1296_s30 }
 0x253   :  { %p1781_p6 = scmp.ne.s32.totalorder %s1296_s30, %s1780_s12  ;;  %p1786_p8 = scmp.lt.s32.totalorder %s1780_s12, %s1780_s12 }
 0x254   :  { %1449 = vmatpush3.bf16.msra.mxu1 %v1670_v8  ;;  %1471 = vmatpush3.bf16.msra.mxu0 %v1671_v9 }
 0x255   :  { %1450 = vmatprep.subr.bf16.mxu1 %v1672_v10  ;;  %1472 = vmatprep.subr.bf16.mxu0 %v1673_v11  ;;  %p1787_p9 = por %p1786_p8, %p1785_p7 }
 0x257   :  { %p1788_p10 = pnand %p1787_p9, %p1781_p6 }
 0x258   :  { %1451 = vmatpush3.bf16.msra.mxu1 %v1674_v12  ;;  %1473 = vmatpush3.bf16.msra.mxu0 %v1675_v13 }
 0x259   :  { %1452 = vmatprep.subr.bf16.mxu1 %v1676_v14  ;;  %1474 = vmatprep.subr.bf16.mxu0 %v1677_v15 }
 0x25c   :  { %1453 = vmatpush3.bf16.msra.mxu1 %v1678_v16  ;;  %1475 = vmatpush3.bf16.msra.mxu0 %v1679_v17 }
 0x25d   :  { %1454 = vmatprep.subr.bf16.mxu1 %v1680_v18  ;;  %1476 = vmatprep.subr.bf16.mxu0 %v1681_v19 }
 0x260   :  { %1455 = vmatpush3.bf16.msra.mxu1 %v1682_v20  ;;  %1477 = vmatpush3.bf16.msra.mxu0 %v1683_v21 }
 0x261   :  { %1456 = vmatprep.subr.bf16.mxu1 %v1684_v22  ;;  %1478 = vmatprep.subr.bf16.mxu0 %v1685_v23 }
 0x264   :  { %1457 = vmatpush3.bf16.msra.mxu1 %v1686_v24  ;;  %1479 = vmatpush3.bf16.msra.mxu0 %v1687_v25 }
 0x265   :  { %1458 = vmatprep.subr.bf16.mxu1 %v1688_v27  ;;  %1480 = vmatprep.subr.bf16.mxu0 %v1689_v28 }
 0x268   :  { %1459 = vmatpush3.bf16.msra.mxu1 %v1690_v29  ;;  %1481 = vmatpush3.bf16.msra.mxu0 %v1691_v30 }
 0x269   :  { %1460 = vmatprep.subr.bf16.mxu1 %v1692_v31  ;;  %1482 = vmatprep.subr.bf16.mxu0 %v1693_v32 }
 0x26c   :  { %1461 = vmatpush3.bf16.msra.mxu1 %v1694_v33  ;;  %1483 = vmatpush3.bf16.msra.mxu0 %v1695_v34 }
 0x30f   :  { %v876_v42 = vpop.f32.mrf.mxu1  ;;  %v917_v43 = vpop.f32.mrf.mxu0 }
 0x310   :  { %v877_v44 = vadd.f32 %v876_v42, %v505_v38  ;;  %v918_v45 = vadd.f32 %v917_v43, %v513_v39 }
 0x311   :  { %v878_v46 = vpop.f32.mrf.mxu1  ;;  %v919_v47 = vpop.f32.mrf.mxu0 }
 0x312   :  { %v924_v48 = vmul.f32 0.2, %v877_v44  ;;  %v926_v49 = vmul.f32 0.2, %v918_v45  ;;  %v879_v50 = vadd.f32 %v878_v46, %v509_v40  ;;  %v920_v53 = vadd.f32 %v919_v47, %v517_v41 }
 0x313   :  { %v880_v55 = vpop.f32.mrf.mxu1  ;;  %v921_v56 = vpop.f32.mrf.mxu0 }
 0x314   :  { %v925_v57 = vmul.f32 0.2, %v879_v50  ;;  %v927_v58 = vmul.f32 0.2, %v920_v53  ;;  %v928_v52 = vmax.f32 %v877_v44, %v924_v48  ;;  %v930_v59 = vmax.f32 %v918_v45, %v926_v49 }
 0x315   :  { %v881_v60 = vpop.f32.mrf.mxu1  ;;  %v922_v51 = vpop.f32.mrf.mxu0 }
 0x316   :  { %v929_v54 = vmax.f32 %v879_v50, %v925_v57  ;;  %v931_v26 = vmax.f32 %v920_v53, %v927_v58  ;;  %v932_v63 = vpack.c.bf16 %v928_v52, %v928_v52  ;;  %v934_v0 = vpack.c.bf16 %v930_v59, %v930_v59 }
 0x318   :  { %v933_v61 = vpack.c.bf16 %v929_v54, %v929_v54  ;;  %v935_v62 = vpack.c.bf16 %v931_v26, %v931_v26 }
 0x31a   :  { %1231 = vmatprep.mubr.bf16.mxu1 %v933_v61  ;;  %1271 = vmatprep.mubr.bf16.mxu0 %v935_v62 }
 0x31b   :  { %1232 = vmatmul.mubr.bf16.vlgmr.msra.gmra.mxu1 %v932_v63  ;;  %1272 = vmatmul.mubr.bf16.vlgmr.msra.gmra.mxu0 %v934_v0 }
 0x3db   :  { %v1462_v1 = vpop.f32.mrf.mxu1  ;;  %v1484_v2 = vpop.f32.mrf.mxu0 }
 0x3dd   :  { %v1463_v4 = vpop.f32.mrf.mxu1  ;;  %v1485_v5 = vpop.f32.mrf.mxu0 }
 0x3de   :  { %v1464_v6 = vadd.f32 %v1463_v4, %v1462_v1  ;;  %v1486_v10 = vadd.f32 %v1485_v5, %v1484_v2 }
 0x3df   :  { %v1465_v7 = vpop.f32.mrf.mxu1  ;;  %v1487_v8 = vpop.f32.mrf.mxu0 }
 0x3e0   :  { %v1234_v9 = vadd.f32 %v1464_v6, %v1401_v3 }
 0x3e1   :  { %v1466_v11 = vpop.f32.mrf.mxu1  ;;  %v1488_v12 = vpop.f32.mrf.mxu0 }
 0x3e2   :  { %v1274_v13 = vadd.f32 %v1486_v10, %v1234_v9 }
 0x3e4   :  { %1279 = vmax.xlane.f32.xlu0 %v1274_v13 }
 0x46d   :  { %v1280_v14 = vpop.xlane.xlu0 %1279 }
 0x46e   :  { %v1281_v15 = vsub.f32 %v1274_v13, %v1280_v14 }
 0x470   :  { %v1282_v16 = vmul.f32 1.442695, %v1281_v15 }
 0x472   :  { %1696 = vpow2.f32 %v1282_v16 }
 0x47f   :  { %v1697_v17 = vpop.eup %1696 }
 0x480   :  { %1284 = vadd.xlane.f32.xlu1 %v1697_v17 }
 0x509   :  { %v1285_v18 = vpop.xlane.xlu1 %1284 }
 0x50a   :  { %1698 = vrcp.f32 %v1285_v18 }
 0x517   :  { %v1699_v19 = vpop.eup %1698 }
 0x518   :  { %v1287_v20 = vmul.f32 %v1699_v19, %v1697_v17 }
 0x51a   :  { %1288 = vst [vmem:[#allocation10] sm:$0xff] %v1287_v20 }
 0x51b   :  { %1791 = shalt.err (!%p1788_p10)
}
 0x51c   :  { %1298 = dma.vmem_to_hbm [thread:$0]  %s1296_s30, 128, %s1949_s11, [#allocation4]  }
 0x51d   :  { %1806 = dma.done.wait [#allocation4], 128  }
 0x51e   :  { %1807 = vsyncadd [#allocation4], 4294967168 }
 0x51f   :  { %1302 = vsyncpa [#allocation3], 1 }
 0x520   :  { %1303 = vsyncpa [#allocation6], 1 }
 0x521   :  { %1304 = vsyncpa [#allocation9], 1 }
 0x522   :  { %1305 = vsyncpa [#allocation4], 1 }

</bundles_post_ra>
